<compile_context>
chip_gen: v6e
topology: v6e:2x2x1
jax: 0.10.0
libtpu: 0.0.40
codegen_flags: <defaults>
</compile_context>

<pallas_src>
import functools

import jax
import jax.numpy as jnp
from jax.experimental import pallas as pl
from jax.experimental.pallas import tpu as pltpu


# ---------------------------------------------------------------------------
# In-kernel helpers
# ---------------------------------------------------------------------------
def _im2col_3x3(a, H, W):
    """a: (C, H*W) activation matrix (channels on sublanes, flat spatial on lanes).

    Returns the (9*C, H*W) stack of the 9 zero-padded 3x3 taps, tap-major
    (tap index t = kh*3 + kw, channel-minor), built with static lane-shifted
    slices + column border masks entirely in VMEM.
    """
    C, S = a.shape
    zpad = jnp.zeros((C, W + 1), a.dtype)
    ap = jnp.concatenate([zpad, a, zpad], axis=1)            # (C, S + 2W + 2)
    col = jax.lax.broadcasted_iota(jnp.int32, (C, S), 1) % W  # w-coordinate per lane
    zero = jnp.zeros((C, S), a.dtype)
    pieces = []
    for dh in (-1, 0, 1):
        for dw in (-1, 0, 1):
            off = (W + 1) + dh * W + dw
            sl = jax.lax.slice(ap, (0, off), (C, off + S))
            if dw == -1:        # tap reads w-1: invalid at w == 0
                sl = jnp.where(col > 0, sl, zero)
            elif dw == 1:       # tap reads w+1: invalid at w == W-1
                sl = jnp.where(col < W - 1, sl, zero)
            pieces.append(sl)
    return jnp.concatenate(pieces, axis=0)                    # (9*C, S)


def _fused_upsample_bn_kernel(x_ref, c_ref, up_ref, w1_ref, w2_ref,
                              s1_ref, b1_ref, s2_ref, b2_ref, o_ref, *, H, W):
    # x_ref : (1, C_x, H_in*W_in)   bf16  low-res input, flattened spatial
    # c_ref : (1, C_c, H*W)         bf16  skip connection, flattened spatial
    # up_ref: (H_in*W_in, H*W)      bf16  kron(R_h, R_w) align_corners interp matrix
    # w1_ref: (Cout, 9*(C_x+C_c))   bf16  conv1 weights, tap-major / channel-minor
    # w2_ref: (Cout, 9*Cout)        bf16  conv2 weights, tap-major / channel-minor
    # s*/b* : (Cout, 1)             f32   folded BatchNorm (eval) scale / bias
    # o_ref : (1, Cout, H*W)        f32

    # 1) bilinear upsample (align_corners=True) == one MXU matmul.
    up = jnp.dot(x_ref[0], up_ref[...], preferred_element_type=jnp.float32)

    # 2) channel concat (torch.cat dim=1) happens in VMEM, never in HBM.
    a1 = jnp.concatenate([up.astype(jnp.bfloat16), c_ref[0]], axis=0)

    # 3) conv1 = im2col + one fat-K matmul, fused folded-BN + LeakyReLU(0.01).
    y1 = jnp.dot(w1_ref[...], _im2col_3x3(a1, H, W),
                 preferred_element_type=jnp.float32)
    y1 = y1 * s1_ref[...] + b1_ref[...]
    y1 = jnp.where(y1 > 0, y1, 0.01 * y1)

    # 4) conv2 on the VMEM-resident intermediate (never written to HBM).
    y2 = jnp.dot(w2_ref[...], _im2col_3x3(y1.astype(jnp.bfloat16), H, W),
                 preferred_element_type=jnp.float32)
    y2 = y2 * s2_ref[...] + b2_ref[...]
    y2 = jnp.where(y2 > 0, y2, 0.01 * y2)

    o_ref[0] = y2.astype(o_ref.dtype)


# ---------------------------------------------------------------------------
# Host-side glue: BN folding, interpolation matrix, weight repacking, pallas_call
# ---------------------------------------------------------------------------
def _interp_matrix(n_out, n_in):
    """(n_out, n_in) 1-D linear-interp matrix, align_corners=True semantics."""
    if n_out > 1:
        src = jnp.arange(n_out, dtype=jnp.float32) * ((n_in - 1) / (n_out - 1))
    else:
        src = jnp.zeros((n_out,), jnp.float32)
    lo = jnp.floor(src).astype(jnp.int32)
    hi = jnp.minimum(lo + 1, n_in - 1)
    w = src - lo.astype(jnp.float32)
    cols = jnp.arange(n_in)[None, :]
    return ((cols == lo[:, None]) * (1.0 - w)[:, None]
            + (cols == hi[:, None]) * w[:, None]).astype(jnp.float32)


def _fold_bn(conv_bias, gamma, beta, mean, var, eps=1e-5):
    scale = gamma / jnp.sqrt(var + eps)
    bias = (conv_bias - mean) * scale + beta
    return scale, bias


@jax.jit
def upsample_bn_forward(x_nchw, concat_nchw, p1, p2):
    """Fused UpSampleBN forward (inference / eval-mode BN). NCHW in, NCHW out."""
    N, C_x, H_in, W_in = x_nchw.shape
    _, C_c, H, W = concat_nchw.shape
    Cout = p1["w"].shape[0]
    Cin1 = C_x + C_c
    S_in, S = H_in * W_in, H * W

    # TODO(synk): training-mode BatchNorm (batch statistics / running-stat updates) is
    # not implemented; BN is folded in eval mode with fixed running stats.
    s1, bb1 = _fold_bn(p1["b"], p1["gamma"], p1["beta"], p1["mean"], p1["var"])
    s2, bb2 = _fold_bn(p2["b"], p2["gamma"], p2["beta"], p2["mean"], p2["var"])

    # Conv weights (Cout, Cin, 3, 3) -> (Cout, 9*Cin), tap-major / channel-minor,
    # matching the im2col row order used inside the kernel.
    w1m = jnp.transpose(p1["w"], (0, 2, 3, 1)).reshape(Cout, 9 * Cin1).astype(jnp.bfloat16)
    w2m = jnp.transpose(p2["w"], (0, 2, 3, 1)).reshape(Cout, 9 * Cout).astype(jnp.bfloat16)

    # align_corners=True bilinear resize as a single (S_in, S) matrix: kron(R_h, R_w)^T.
    bmat = jnp.kron(_interp_matrix(H, H_in), _interp_matrix(W, W_in)).T.astype(jnp.bfloat16)

    # (N, C, H, W) -> (N, C, H*W): free reshape; flat spatial lands on the lane axis.
    x_flat = x_nchw.reshape(N, C_x, S_in).astype(jnp.bfloat16)
    c_flat = concat_nchw.reshape(N, C_c, S).astype(jnp.bfloat16)

    kernel = functools.partial(_fused_upsample_bn_kernel, H=H, W=W)
    out_flat = pl.pallas_call(
        kernel,
        out_shape=jax.ShapeDtypeStruct((N, Cout, S), jnp.float32),
        grid=(N,),
        in_specs=[
            pl.BlockSpec((1, C_x, S_in), lambda n: (n, 0, 0)),
            pl.BlockSpec((1, C_c, S), lambda n: (n, 0, 0)),
            pl.BlockSpec((S_in, S), lambda n: (0, 0)),
            pl.BlockSpec((Cout, 9 * Cin1), lambda n: (0, 0)),
            pl.BlockSpec((Cout, 9 * Cout), lambda n: (0, 0)),
            pl.BlockSpec((Cout, 1), lambda n: (0, 0)),
            pl.BlockSpec((Cout, 1), lambda n: (0, 0)),
            pl.BlockSpec((Cout, 1), lambda n: (0, 0)),
            pl.BlockSpec((Cout, 1), lambda n: (0, 0)),
        ],
        out_specs=pl.BlockSpec((1, Cout, S), lambda n: (n, 0, 0)),
        compiler_params=pltpu.CompilerParams(
            dimension_semantics=("parallel",)),
    )(x_flat, c_flat, bmat, w1m, w2m,
      s1.reshape(Cout, 1), bb1.reshape(Cout, 1),
      s2.reshape(Cout, 1), bb2.reshape(Cout, 1))

    # TODO(synk): for production monoscene shapes (hundreds of channels, large H*W) add
    # spatial-row tiling with a 2-row halo, output-channel tiling with a VMEM f32
    # accumulator, and an explicit vmem_limit_bytes budget (v7x has only 64 MiB VMEM).
    return out_flat.reshape(N, Cout, H, W)


# ---------------------------------------------------------------------------
# Pure-JAX f32 reference (mirrors the PyTorch module, eval-mode BN) + demo
# ---------------------------------------------------------------------------
def _reference_forward(x, cw, p1, p2, eps=1e-5):
    N, C, Hi, Wi = x.shape
    H, W = cw.shape[2], cw.shape[3]
    ys = jnp.linspace(0.0, Hi - 1, H) if H > 1 else jnp.zeros((H,), jnp.float32)
    xs = jnp.linspace(0.0, Wi - 1, W) if W > 1 else jnp.zeros((W,), jnp.float32)
    y0 = jnp.floor(ys).astype(jnp.int32); y1 = jnp.minimum(y0 + 1, Hi - 1)
    x0 = jnp.floor(xs).astype(jnp.int32); x1 = jnp.minimum(x0 + 1, Wi - 1)
    wy = (ys - y0)[None, None, :, None]
    wx = (xs - x0)[None, None, None, :]
    rows = x[:, :, y0, :] * (1.0 - wy) + x[:, :, y1, :] * wy
    up = rows[:, :, :, x0] * (1.0 - wx) + rows[:, :, :, x1] * wx
    f = jnp.concatenate([up, cw], axis=1)

    def layer(t, p):
        y = jax.lax.conv_general_dilated(
            t, p["w"], window_strides=(1, 1), padding=((1, 1), (1, 1)),
            dimension_numbers=("NCHW", "OIHW", "NCHW"))
        y = y + p["b"][None, :, None, None]
        inv = 1.0 / jnp.sqrt(p["var"] + eps)
        y = ((y - p["mean"][None, :, None, None]) * (p["gamma"] * inv)[None, :, None, None]
             + p["beta"][None, :, None, None])
        return jnp.where(y > 0, y, 0.01 * y)

    return layer(layer(f, p1), p2)


def _make_params(key, skip_input, output_features):
    def layer(k, cin, cout):
        kw, kb, kg, kbt, km, kv = jax.random.split(k, 6)
        return dict(
            w=0.1 * jax.random.normal(kw, (cout, cin, 3, 3), jnp.float32),  # OIHW (PyTorch)
            b=0.1 * jax.random.normal(kb, (cout,), jnp.float32),
            gamma=1.0 + 0.1 * jax.random.normal(kg, (cout,), jnp.float32),
            beta=0.1 * jax.random.normal(kbt, (cout,), jnp.float32),
            mean=0.1 * jax.random.normal(km, (cout,), jnp.float32),
            var=0.5 + jnp.abs(jax.random.normal(kv, (cout,), jnp.float32)),
        )
    k1, k2 = jax.random.split(key)
    return layer(k1, skip_input, output_features), layer(k2, output_features, output_features)


if __name__ == "__main__":
    key = jax.random.PRNGKey(0)
    kx, kc, kp = jax.random.split(key, 3)

    # Small shapes consistent with the module's forward:
    #   x:           (N, C_x, H_in, W_in)   -> upsampled to concat_with's spatial size
    #   concat_with: (N, C_c, H_out, W_out)
    N, C_x, H_in, W_in = 2, 4, 8, 8
    C_c, H_out, W_out = 4, 16, 16
    skip_input = C_x + C_c          # 8
    output_features = 16

    x = jax.random.normal(kx, (N, C_x, H_in, W_in), jnp.float32)
    concat_with = jax.random.normal(kc, (N, C_c, H_out, W_out), jnp.float32)
    p1, p2 = _make_params(kp, skip_input, output_features)

    out = upsample_bn_forward(x, concat_with, p1, p2)
    out = jax.block_until_ready(out)
    assert out.shape == (N, output_features, H_out, W_out), out.shape
    assert bool(jnp.all(jnp.isfinite(out)))

    # Sanity check vs. a pure-JAX f32 reference (kernel MXU operands are bf16).
    ref = _reference_forward(x, concat_with, p1, p2)
    rel = float(jnp.linalg.norm(out - ref) / (jnp.linalg.norm(ref) + 1e-8))
    assert rel < 5e-2, f"relative error too large: {rel}"
    print("KERNEL_OK")
</pallas_src>

<mosaic_0001>
module attributes {stable_mosaic.version = 11 : i64} {
  func.func @_fused_upsample_bn_kernel(%arg0: i32, %arg1: memref<1x4x64xbf16, #tpu.memory_space<vmem>>, %arg2: memref<1x4x256xbf16, #tpu.memory_space<vmem>>, %arg3: memref<64x256xbf16, #tpu.memory_space<vmem>>, %arg4: memref<16x72xbf16, #tpu.memory_space<vmem>>, %arg5: memref<16x144xbf16, #tpu.memory_space<vmem>>, %arg6: memref<16x1xf32, #tpu.memory_space<vmem>>, %arg7: memref<16x1xf32, #tpu.memory_space<vmem>>, %arg8: memref<16x1xf32, #tpu.memory_space<vmem>>, %arg9: memref<16x1xf32, #tpu.memory_space<vmem>>, %arg10: memref<1x16x256xf32, #tpu.memory_space<vmem>>) attributes {dimension_semantics = [#tpu.dimension_semantics<parallel>], iteration_bounds = array<i64: 2>, scalar_prefetch = 0 : i64, scratch_operands = 0 : i64, tpu.core_type = #tpu.core_type<tc>, window_params = [{transform_indices = @transform_0, window_bounds = array<i64: 1, 4, 64>}, {transform_indices = @transform_1, window_bounds = array<i64: 1, 4, 256>}, {pipeline_mode = #tpu.pipeline_mode<synchronous>, transform_indices = @transform_2, window_bounds = array<i64: 64, 256>}, {pipeline_mode = #tpu.pipeline_mode<synchronous>, transform_indices = @transform_3, window_bounds = array<i64: 16, 72>}, {pipeline_mode = #tpu.pipeline_mode<synchronous>, transform_indices = @transform_4, window_bounds = array<i64: 16, 144>}, {pipeline_mode = #tpu.pipeline_mode<synchronous>, transform_indices = @transform_5, window_bounds = array<i64: 16, 1>}, {pipeline_mode = #tpu.pipeline_mode<synchronous>, transform_indices = @transform_6, window_bounds = array<i64: 16, 1>}, {pipeline_mode = #tpu.pipeline_mode<synchronous>, transform_indices = @transform_7, window_bounds = array<i64: 16, 1>}, {pipeline_mode = #tpu.pipeline_mode<synchronous>, transform_indices = @transform_8, window_bounds = array<i64: 16, 1>}, {transform_indices = @transform_9, window_bounds = array<i64: 1, 16, 256>}]} {
    %c0 = arith.constant 0 : index
    %c0_0 = arith.constant 0 : index
    %c0_1 = arith.constant 0 : index
    %0 = vector.load %arg1[%c0, %c0_0, %c0_1] : memref<1x4x64xbf16, #tpu.memory_space<vmem>>, vector<1x4x64xbf16>
    %1 = vector.shape_cast %0 : vector<1x4x64xbf16> to vector<4x64xbf16>
    %c0_2 = arith.constant 0 : index
    %c0_3 = arith.constant 0 : index
    %2 = vector.load %arg3[%c0_2, %c0_3] : memref<64x256xbf16, #tpu.memory_space<vmem>>, vector<64x256xbf16>
    %cst = arith.constant dense<0.000000e+00> : vector<4x256xf32>
    %3 = tpu.matmul %1, %2, %cst {dimension_numbers = #tpu.dot_dimension_numbers<[1], [0], [0], [1], [0, 0, 1, 1], [], []>} : vector<4x64xbf16>, vector<64x256xbf16>, vector<4x256xf32> -> vector<4x256xf32>
    %4 = arith.truncf %3 : vector<4x256xf32> to vector<4x256xbf16>
    %c0_4 = arith.constant 0 : index
    %c0_5 = arith.constant 0 : index
    %c0_6 = arith.constant 0 : index
    %5 = vector.load %arg2[%c0_4, %c0_5, %c0_6] : memref<1x4x256xbf16, #tpu.memory_space<vmem>>, vector<1x4x256xbf16>
    %6 = vector.shape_cast %5 : vector<1x4x256xbf16> to vector<4x256xbf16>
    %7 = tpu.concatenate %4, %6 in 0 : vector<4x256xbf16>, vector<4x256xbf16> -> vector<8x256xbf16>
    %c0_7 = arith.constant 0 : index
    %c0_8 = arith.constant 0 : index
    %8 = vector.load %arg4[%c0_7, %c0_8] : memref<16x72xbf16, #tpu.memory_space<vmem>>, vector<16x72xbf16>
    %cst_9 = arith.constant 0.000000e+00 : bf16
    %9 = vector.broadcast %cst_9 : bf16 to vector<8x17xbf16>
    %10 = tpu.concatenate %9, %7, %9 in 1 : vector<8x17xbf16>, vector<8x256xbf16>, vector<8x17xbf16> -> vector<8x290xbf16>
    %11 = tpu.iota {dimensions = array<i32: 1>} : vector<8x256xi32>
    %c16_i32 = arith.constant 16 : i32
    %c0_i32 = arith.constant 0 : i32
    %12 = arith.cmpi eq, %c16_i32, %c0_i32 : i32
    %c1_i32 = arith.constant 1 : i32
    %13 = arith.select %12, %c1_i32, %c16_i32 : i32
    %14 = vector.broadcast %13 : i32 to vector<8x256xi32>
    %15 = arith.remsi %11, %14 : vector<8x256xi32>
    %c0_i32_10 = arith.constant 0 : i32
    %16 = vector.broadcast %c0_i32_10 : i32 to vector<8x256xi32>
    %17 = arith.cmpi ne, %15, %16 : vector<8x256xi32>
    %c0_i32_11 = arith.constant 0 : i32
    %18 = vector.broadcast %c0_i32_11 : i32 to vector<8x256xi32>
    %19 = arith.cmpi slt, %15, %18 : vector<8x256xi32>
    %c0_i32_12 = arith.constant 0 : i32
    %20 = arith.cmpi slt, %13, %c0_i32_12 : i32
    %21 = vector.broadcast %20 : i1 to vector<8x256xi1>
    %22 = vector.broadcast %21 : vector<8x256xi1> to vector<8x256xi1>
    %23 = arith.xori %19, %22 : vector<8x256xi1>
    %24 = arith.andi %23, %17 : vector<8x256xi1>
    %25 = vector.broadcast %13 : i32 to vector<8x256xi32>
    %26 = arith.addi %15, %25 : vector<8x256xi32>
    %27 = arith.select %24, %26, %15 : vector<8x256xi1>, vector<8x256xi32>
    %cst_13 = arith.constant 0.000000e+00 : bf16
    %28 = vector.broadcast %cst_13 : bf16 to vector<8x256xbf16>
    %29 = vector.extract_strided_slice %10 {offsets = [0, 0], sizes = [8, 256], strides = [1, 1]} : vector<8x290xbf16> to vector<8x256xbf16>
    %c0_i32_14 = arith.constant 0 : i32
    %30 = vector.broadcast %c0_i32_14 : i32 to vector<8x256xi32>
    %31 = arith.cmpi sgt, %27, %30 : vector<8x256xi32>
    %32 = arith.select %31, %29, %28 : vector<8x256xi1>, vector<8x256xbf16>
    %33 = vector.extract_strided_slice %10 {offsets = [0, 1], sizes = [8, 256], strides = [1, 1]} : vector<8x290xbf16> to vector<8x256xbf16>
    %34 = vector.extract_strided_slice %10 {offsets = [0, 2], sizes = [8, 256], strides = [1, 1]} : vector<8x290xbf16> to vector<8x256xbf16>
    %c15_i32 = arith.constant 15 : i32
    %35 = vector.broadcast %c15_i32 : i32 to vector<8x256xi32>
    %36 = arith.cmpi slt, %27, %35 : vector<8x256xi32>
    %37 = arith.select %36, %34, %28 : vector<8x256xi1>, vector<8x256xbf16>
    %38 = vector.extract_strided_slice %10 {offsets = [0, 16], sizes = [8, 256], strides = [1, 1]} : vector<8x290xbf16> to vector<8x256xbf16>
    %c0_i32_15 = arith.constant 0 : i32
    %39 = vector.broadcast %c0_i32_15 : i32 to vector<8x256xi32>
    %40 = arith.cmpi sgt, %27, %39 : vector<8x256xi32>
    %41 = arith.select %40, %38, %28 : vector<8x256xi1>, vector<8x256xbf16>
    %42 = vector.extract_strided_slice %10 {offsets = [0, 17], sizes = [8, 256], strides = [1, 1]} : vector<8x290xbf16> to vector<8x256xbf16>
    %43 = vector.extract_strided_slice %10 {offsets = [0, 18], sizes = [8, 256], strides = [1, 1]} : vector<8x290xbf16> to vector<8x256xbf16>
    %c15_i32_16 = arith.constant 15 : i32
    %44 = vector.broadcast %c15_i32_16 : i32 to vector<8x256xi32>
    %45 = arith.cmpi slt, %27, %44 : vector<8x256xi32>
    %46 = arith.select %45, %43, %28 : vector<8x256xi1>, vector<8x256xbf16>
    %47 = vector.extract_strided_slice %10 {offsets = [0, 32], sizes = [8, 256], strides = [1, 1]} : vector<8x290xbf16> to vector<8x256xbf16>
    %c0_i32_17 = arith.constant 0 : i32
    %48 = vector.broadcast %c0_i32_17 : i32 to vector<8x256xi32>
    %49 = arith.cmpi sgt, %27, %48 : vector<8x256xi32>
    %50 = arith.select %49, %47, %28 : vector<8x256xi1>, vector<8x256xbf16>
    %51 = vector.extract_strided_slice %10 {offsets = [0, 33], sizes = [8, 256], strides = [1, 1]} : vector<8x290xbf16> to vector<8x256xbf16>
    %52 = vector.extract_strided_slice %10 {offsets = [0, 34], sizes = [8, 256], strides = [1, 1]} : vector<8x290xbf16> to vector<8x256xbf16>
    %c15_i32_18 = arith.constant 15 : i32
    %53 = vector.broadcast %c15_i32_18 : i32 to vector<8x256xi32>
    %54 = arith.cmpi slt, %27, %53 : vector<8x256xi32>
    %55 = arith.select %54, %52, %28 : vector<8x256xi1>, vector<8x256xbf16>
    %56 = tpu.concatenate %32, %33, %37, %41, %42, %46, %50, %51, %55 in 0 : vector<8x256xbf16>, vector<8x256xbf16>, vector<8x256xbf16>, vector<8x256xbf16>, vector<8x256xbf16>, vector<8x256xbf16>, vector<8x256xbf16>, vector<8x256xbf16>, vector<8x256xbf16> -> vector<72x256xbf16>
    %cst_19 = arith.constant dense<0.000000e+00> : vector<16x256xf32>
    %57 = tpu.matmul %8, %56, %cst_19 {dimension_numbers = #tpu.dot_dimension_numbers<[1], [0], [0], [1], [0, 0, 1, 1], [], []>} : vector<16x72xbf16>, vector<72x256xbf16>, vector<16x256xf32> -> vector<16x256xf32>
    %c0_20 = arith.constant 0 : index
    %c0_21 = arith.constant 0 : index
    %58 = vector.load %arg6[%c0_20, %c0_21] : memref<16x1xf32, #tpu.memory_space<vmem>>, vector<16x1xf32>
    %59 = vector.broadcast %58 : vector<16x1xf32> to vector<16x256xf32>
    %60 = arith.mulf %57, %59 : vector<16x256xf32>
    %c0_22 = arith.constant 0 : index
    %c0_23 = arith.constant 0 : index
    %61 = vector.load %arg7[%c0_22, %c0_23] : memref<16x1xf32, #tpu.memory_space<vmem>>, vector<16x1xf32>
    %62 = vector.broadcast %61 : vector<16x1xf32> to vector<16x256xf32>
    %63 = arith.addf %60, %62 : vector<16x256xf32>
    %cst_24 = arith.constant 0.000000e+00 : f32
    %64 = vector.broadcast %cst_24 : f32 to vector<16x256xf32>
    %65 = arith.cmpf ogt, %63, %64 : vector<16x256xf32>
    %cst_25 = arith.constant 0.00999999977 : f32
    %66 = vector.broadcast %cst_25 : f32 to vector<16x256xf32>
    %67 = arith.mulf %66, %63 : vector<16x256xf32>
    %68 = arith.select %65, %63, %67 : vector<16x256xi1>, vector<16x256xf32>
    %c0_26 = arith.constant 0 : index
    %c0_27 = arith.constant 0 : index
    %69 = vector.load %arg5[%c0_26, %c0_27] : memref<16x144xbf16, #tpu.memory_space<vmem>>, vector<16x144xbf16>
    %70 = arith.truncf %68 : vector<16x256xf32> to vector<16x256xbf16>
    %cst_28 = arith.constant 0.000000e+00 : bf16
    %71 = vector.broadcast %cst_28 : bf16 to vector<16x17xbf16>
    %72 = tpu.concatenate %71, %70, %71 in 1 : vector<16x17xbf16>, vector<16x256xbf16>, vector<16x17xbf16> -> vector<16x290xbf16>
    %73 = tpu.iota {dimensions = array<i32: 1>} : vector<16x256xi32>
    %c16_i32_29 = arith.constant 16 : i32
    %c0_i32_30 = arith.constant 0 : i32
    %74 = arith.cmpi eq, %c16_i32_29, %c0_i32_30 : i32
    %c1_i32_31 = arith.constant 1 : i32
    %75 = arith.select %74, %c1_i32_31, %c16_i32_29 : i32
    %76 = vector.broadcast %75 : i32 to vector<16x256xi32>
    %77 = arith.remsi %73, %76 : vector<16x256xi32>
    %c0_i32_32 = arith.constant 0 : i32
    %78 = vector.broadcast %c0_i32_32 : i32 to vector<16x256xi32>
    %79 = arith.cmpi ne, %77, %78 : vector<16x256xi32>
    %c0_i32_33 = arith.constant 0 : i32
    %80 = vector.broadcast %c0_i32_33 : i32 to vector<16x256xi32>
    %81 = arith.cmpi slt, %77, %80 : vector<16x256xi32>
    %c0_i32_34 = arith.constant 0 : i32
    %82 = arith.cmpi slt, %75, %c0_i32_34 : i32
    %83 = vector.broadcast %82 : i1 to vector<16x256xi1>
    %84 = vector.broadcast %83 : vector<16x256xi1> to vector<16x256xi1>
    %85 = arith.xori %81, %84 : vector<16x256xi1>
    %86 = arith.andi %85, %79 : vector<16x256xi1>
    %87 = vector.broadcast %75 : i32 to vector<16x256xi32>
    %88 = arith.addi %77, %87 : vector<16x256xi32>
    %89 = arith.select %86, %88, %77 : vector<16x256xi1>, vector<16x256xi32>
    %cst_35 = arith.constant 0.000000e+00 : bf16
    %90 = vector.broadcast %cst_35 : bf16 to vector<16x256xbf16>
    %91 = vector.extract_strided_slice %72 {offsets = [0, 0], sizes = [16, 256], strides = [1, 1]} : vector<16x290xbf16> to vector<16x256xbf16>
    %c0_i32_36 = arith.constant 0 : i32
    %92 = vector.broadcast %c0_i32_36 : i32 to vector<16x256xi32>
    %93 = arith.cmpi sgt, %89, %92 : vector<16x256xi32>
    %94 = arith.select %93, %91, %90 : vector<16x256xi1>, vector<16x256xbf16>
    %95 = vector.extract_strided_slice %72 {offsets = [0, 1], sizes = [16, 256], strides = [1, 1]} : vector<16x290xbf16> to vector<16x256xbf16>
    %96 = vector.extract_strided_slice %72 {offsets = [0, 2], sizes = [16, 256], strides = [1, 1]} : vector<16x290xbf16> to vector<16x256xbf16>
    %c15_i32_37 = arith.constant 15 : i32
    %97 = vector.broadcast %c15_i32_37 : i32 to vector<16x256xi32>
    %98 = arith.cmpi slt, %89, %97 : vector<16x256xi32>
    %99 = arith.select %98, %96, %90 : vector<16x256xi1>, vector<16x256xbf16>
    %100 = vector.extract_strided_slice %72 {offsets = [0, 16], sizes = [16, 256], strides = [1, 1]} : vector<16x290xbf16> to vector<16x256xbf16>
    %c0_i32_38 = arith.constant 0 : i32
    %101 = vector.broadcast %c0_i32_38 : i32 to vector<16x256xi32>
    %102 = arith.cmpi sgt, %89, %101 : vector<16x256xi32>
    %103 = arith.select %102, %100, %90 : vector<16x256xi1>, vector<16x256xbf16>
    %104 = vector.extract_strided_slice %72 {offsets = [0, 17], sizes = [16, 256], strides = [1, 1]} : vector<16x290xbf16> to vector<16x256xbf16>
    %105 = vector.extract_strided_slice %72 {offsets = [0, 18], sizes = [16, 256], strides = [1, 1]} : vector<16x290xbf16> to vector<16x256xbf16>
    %c15_i32_39 = arith.constant 15 : i32
    %106 = vector.broadcast %c15_i32_39 : i32 to vector<16x256xi32>
    %107 = arith.cmpi slt, %89, %106 : vector<16x256xi32>
    %108 = arith.select %107, %105, %90 : vector<16x256xi1>, vector<16x256xbf16>
    %109 = vector.extract_strided_slice %72 {offsets = [0, 32], sizes = [16, 256], strides = [1, 1]} : vector<16x290xbf16> to vector<16x256xbf16>
    %c0_i32_40 = arith.constant 0 : i32
    %110 = vector.broadcast %c0_i32_40 : i32 to vector<16x256xi32>
    %111 = arith.cmpi sgt, %89, %110 : vector<16x256xi32>
    %112 = arith.select %111, %109, %90 : vector<16x256xi1>, vector<16x256xbf16>
    %113 = vector.extract_strided_slice %72 {offsets = [0, 33], sizes = [16, 256], strides = [1, 1]} : vector<16x290xbf16> to vector<16x256xbf16>
    %114 = vector.extract_strided_slice %72 {offsets = [0, 34], sizes = [16, 256], strides = [1, 1]} : vector<16x290xbf16> to vector<16x256xbf16>
    %c15_i32_41 = arith.constant 15 : i32
    %115 = vector.broadcast %c15_i32_41 : i32 to vector<16x256xi32>
    %116 = arith.cmpi slt, %89, %115 : vector<16x256xi32>
    %117 = arith.select %116, %114, %90 : vector<16x256xi1>, vector<16x256xbf16>
    %118 = tpu.concatenate %94, %95, %99, %103, %104, %108, %112, %113, %117 in 0 : vector<16x256xbf16>, vector<16x256xbf16>, vector<16x256xbf16>, vector<16x256xbf16>, vector<16x256xbf16>, vector<16x256xbf16>, vector<16x256xbf16>, vector<16x256xbf16>, vector<16x256xbf16> -> vector<144x256xbf16>
    %cst_42 = arith.constant dense<0.000000e+00> : vector<16x256xf32>
    %119 = tpu.matmul %69, %118, %cst_42 {dimension_numbers = #tpu.dot_dimension_numbers<[1], [0], [0], [1], [0, 0, 1, 1], [], []>} : vector<16x144xbf16>, vector<144x256xbf16>, vector<16x256xf32> -> vector<16x256xf32>
    %c0_43 = arith.constant 0 : index
    %c0_44 = arith.constant 0 : index
    %120 = vector.load %arg8[%c0_43, %c0_44] : memref<16x1xf32, #tpu.memory_space<vmem>>, vector<16x1xf32>
    %121 = vector.broadcast %120 : vector<16x1xf32> to vector<16x256xf32>
    %122 = arith.mulf %119, %121 : vector<16x256xf32>
    %c0_45 = arith.constant 0 : index
    %c0_46 = arith.constant 0 : index
    %123 = vector.load %arg9[%c0_45, %c0_46] : memref<16x1xf32, #tpu.memory_space<vmem>>, vector<16x1xf32>
    %124 = vector.broadcast %123 : vector<16x1xf32> to vector<16x256xf32>
    %125 = arith.addf %122, %124 : vector<16x256xf32>
    %cst_47 = arith.constant 0.000000e+00 : f32
    %126 = vector.broadcast %cst_47 : f32 to vector<16x256xf32>
    %127 = arith.cmpf ogt, %125, %126 : vector<16x256xf32>
    %cst_48 = arith.constant 0.00999999977 : f32
    %128 = vector.broadcast %cst_48 : f32 to vector<16x256xf32>
    %129 = arith.mulf %128, %125 : vector<16x256xf32>
    %130 = arith.select %127, %125, %129 : vector<16x256xi1>, vector<16x256xf32>
    %c0_49 = arith.constant 0 : index
    %c0_50 = arith.constant 0 : index
    %c0_51 = arith.constant 0 : index
    %131 = vector.load %arg10[%c0_49, %c0_50, %c0_51] : memref<1x16x256xf32, #tpu.memory_space<vmem>>, vector<1x16x256xf32>
    %132 = vector.shape_cast %131 : vector<1x16x256xf32> to vector<16x256xf32>
    %133 = vector.shape_cast %130 : vector<16x256xf32> to vector<1x16x256xf32>
    tpu.vector_store %arg10[%c0_49, %c0_50, %c0_51], %133 {strides = array<i32>} : memref<1x16x256xf32, #tpu.memory_space<vmem>>, vector<1x16x256xf32>,
    return
  }
  func.func @transform_0(%arg0: i32) -> (i32, i32, i32) {
    %c0_i32 = arith.constant 0 : i32
    %c0_i32_0 = arith.constant 0 : i32
    %c0_i32_1 = arith.constant 0 : i32
    return %arg0, %c0_i32, %c0_i32_0 : i32, i32, i32
  }
  func.func @transform_1(%arg0: i32) -> (i32, i32, i32) {
    %c0_i32 = arith.constant 0 : i32
    %c0_i32_0 = arith.constant 0 : i32
    %c0_i32_1 = arith.constant 0 : i32
    return %arg0, %c0_i32, %c0_i32_0 : i32, i32, i32
  }
  func.func @transform_2(%arg0: i32) -> (i32, i32) {
    %c0_i32 = arith.constant 0 : i32
    %c0_i32_0 = arith.constant 0 : i32
    %c0_i32_1 = arith.constant 0 : i32
    return %c0_i32, %c0_i32_0 : i32, i32
  }
  func.func @transform_3(%arg0: i32) -> (i32, i32) {
    %c0_i32 = arith.constant 0 : i32
    %c0_i32_0 = arith.constant 0 : i32
    %c0_i32_1 = arith.constant 0 : i32
    return %c0_i32, %c0_i32_0 : i32, i32
  }
  func.func @transform_4(%arg0: i32) -> (i32, i32) {
    %c0_i32 = arith.constant 0 : i32
    %c0_i32_0 = arith.constant 0 : i32
    %c0_i32_1 = arith.constant 0 : i32
    return %c0_i32, %c0_i32_0 : i32, i32
  }
  func.func @transform_5(%arg0: i32) -> (i32, i32) {
    %c0_i32 = arith.constant 0 : i32
    %c0_i32_0 = arith.constant 0 : i32
    %c0_i32_1 = arith.constant 0 : i32
    return %c0_i32, %c0_i32_0 : i32, i32
  }
  func.func @transform_6(%arg0: i32) -> (i32, i32) {
    %c0_i32 = arith.constant 0 : i32
    %c0_i32_0 = arith.constant 0 : i32
    %c0_i32_1 = arith.constant 0 : i32
    return %c0_i32, %c0_i32_0 : i32, i32
  }
  func.func @transform_7(%arg0: i32) -> (i32, i32) {
    %c0_i32 = arith.constant 0 : i32
    %c0_i32_0 = arith.constant 0 : i32
    %c0_i32_1 = arith.constant 0 : i32
    return %c0_i32, %c0_i32_0 : i32, i32
  }
  func.func @transform_8(%arg0: i32) -> (i32, i32) {
    %c0_i32 = arith.constant 0 : i32
    %c0_i32_0 = arith.constant 0 : i32
    %c0_i32_1 = arith.constant 0 : i32
    return %c0_i32, %c0_i32_0 : i32, i32
  }
  func.func @transform_9(%arg0: i32) -> (i32, i32, i32) {
    %c0_i32 = arith.constant 0 : i32
    %c0_i32_0 = arith.constant 0 : i32
    %c0_i32_1 = arith.constant 0 : i32
    return %arg0, %c0_i32, %c0_i32_0 : i32, i32, i32
  }
}

</mosaic_0001>

<bundles_post_ra>
// kernel: upsample_bn_forward.1
= control target key start
LH: loop header
LB: loop body
LE: loop exit
PB: predicated region body
PF: predicated region fallthrough
CT: control target
= control target key end

     0   :  { %s1284_s30 = smov 0   ;;  %s1656_s0 = inlined_call_operand.vmem [shape: bf16[2,4,64], index: 0, kind: input, shape index: {}]   ;;  %s1657_s1 = inlined_call_operand.vmem [shape: bf16[2,4,256], index: 1, kind: input, shape index: {}]   ;;  %s1658_s2 = inlined_call_operand.vmem [shape: bf16[64,256], index: 2, kind: input, shape index: {}]   ;;  %s1659_s3 = inlined_call_operand.vmem [shape: bf16[16,72], index: 3, kind: input, shape index: {}]   ;;  %s1660_s4 = inlined_call_operand.vmem [shape: bf16[16,144], index: 4, kind: input, shape index: {}]   ;;  %s1661_s5 = inlined_call_operand.vmem [shape: f32[16,1], index: 5, kind: input, shape index: {}]   ;;  %s1662_s6 = inlined_call_operand.vmem [shape: f32[16,1], index: 6, kind: input, shape index: {}]   ;;  %s1663_s7 = inlined_call_operand.vmem [shape: f32[16,1], index: 7, kind: input, shape index: {}]   ;;  %s1664_s8 = inlined_call_operand.vmem [shape: f32[16,1], index: 8, kind: input, shape index: {}]   ;;  %s1665_s9 = inlined_call_operand.vmem [shape: f32[2,16,256], index: 9, kind: output, shape index: {}]  }
   0x1 LB: > { %s1137_s10 = sadd.s32 4294967295, %s1216_s30   ;;  %p1141_p0 = scmp.ge.s32.totalorder %s1216_s30, 1  ;;  %s1216_s30 = sphi %s1284_s30, %s19_s30  }
   0x2   : > { %p296_p1 = scmp.lt.s32.totalorder %s1216_s30, 3 }
   0x4   : > { %p297_p2 = pnand %p1141_p0, %p296_p1 }
   0x5   : > { %p336_p3 = scmp.lt.s32.totalorder (!%p297_p2), %s1137_s10, 1  ;;  %s1219_s12 = smov (!%p297_p2), 34  }
   0x6   : > { %300 = sbr.rel (%p297_p2) target bundleno = 1204 (0x4b4), region = 56  ;;  %s1220_s13 = smov (!%p297_p2), 32  }
   0x7   : > { %s1221_s14 = smov (!%p297_p2), 18   ;;  %s1222_s15 = smov (!%p297_p2), 16  }
   0x8   : > { %s1223_s20 = smov (!%p297_p2), 2   ;;  %s1225_s21 = smov (!%p297_p2), 17  }
   0x9   : > { %s1226_s22 = smov (!%p297_p2), 111   ;;  %s1227_s23 = smov (!%p297_p2), 94  }
   0xa   : > { %s1228_s24 = smov (!%p297_p2), 96   ;;  %s1230_s26 = smov (!%p297_p2), 126  }
   0xb   : > { %v1193_v0 = vld [vmem:[%s1658_s2 + $0x34] ss:$8 sps:$4 sm:$0xff]   ;;  %v455_v1 = vlaneseq  ;;  %v1195_v2 = vld [vmem:[%s1658_s2 + $0x30] ss:$8 sps:$4 sm:$0xff]   ;;  %v1218_v3 = vmov 0   ;;  %s1703_s10 = smov (!%p336_p3, %s1137_s10), 1 }
   0xc   : > { %438 = vmatprep.mubr.bf16.mxu1 %v1218_v3  ;;  %1192 = vset.pattern.permute.xlu1 %v1218_v3  ;;  %v1196_v4 = vld [vmem:[%s1658_s2 + $0x24] ss:$8 sps:$4 sm:$0xff]   ;;  %v1198_v5 = vld [vmem:[%s1658_s2 + $0x20] ss:$8 sps:$4 sm:$0xff]   ;;  %v1199_v6 = vld [vmem:[%s1658_s2 + $0x14] ss:$8 sps:$4 sm:$0xff]  }
   0xd   : > { %414 = vmatprep.subr.bf16.mxu1 %v1193_v0  ;;  %1191 = vset.pattern.permute.xlu0 %v1218_v3  ;;  %v487_v7 = vand.u32 127, %v455_v1  ;;  %v456_v8 = vshrl.u32 %v455_v1, 7  ;;  %v1201_v9 = vld [vmem:[%s1658_s2 + $0x10] ss:$8 sps:$4 sm:$0xff]   ;;  %v1202_v12 = vld [vmem:[%s1658_s2 + $0x4] ss:$8 sps:$4 sm:$0xff]  }
   0xe   : > { %415 = vmatpush1.bf16.msra.mxu1 %v1195_v2  ;;  %s1142_s25 = sshll.u32 %s1703_s10, 1  ;;  %v1204_v15 = vld [vmem:[%s1658_s2] ss:$8 sps:$4 sm:$0xff]   ;;  %vm402_vm6 = vcmask 523264   ;;  %s1165_s16 = sshll.u32 %s1703_s10, 2  ;;  %vm460_vm7 = vcmask 1041408  }
   0xf   : > { %416 = vmatprep.subr.bf16.mxu1 %v1196_v4  ;;  %v488_v10 = vadd.s32 128, %v487_v7  ;;  %v493_v11 = vand.u32 15, %v487_v7  ;;  %v519_v14 = vsub.s32 0, %v456_v8  ;;  %v523_v16 = vsub.s32 4, %v456_v8  ;;  %s339_s11 = scalar_lea.vmem %s1656_s0, %s1142_s25  ;;  %s344_s19 = scalar_lea.vmem %s1657_s1, %s1165_s16 }
  0x10   : > { %v353_v21 = vld [vmem:[%s339_s11] sm:$0x3]  ;;  %v1224_v24 = vmov 1983009808   ;;  %vm475_vm8 = vcmask 138240   ;;  %s1229_s25 = smov 95  }
  0x11   : > { %v500_v13 = vand.u32 15, %v488_v10  ;;  %vm529_vm0 = vcmp.lt.s32.totalorder %v493_v11, 15  ;;  %vm513_vm1 = vcmp.gt.s32.totalorder %v493_v11, 0  ;;  %v453_v25 = vunpack.c.l.s4 %v1224_v24  ;;  %v1205_v27 = vld [vmem:[%s344_s19] ss:$0 sps:$4 sm:$0xff]   ;;  %s1231_s27 = smov 110  }
  0x12   : > { %417 = vmatpush1.bf16.msra.mxu1 %v1198_v5  ;;  %vm593_vm12 = vcmask 277504   ;;  %vm581_vm14 = vcmask 261120   ;;  %s1232_s28 = smov 112   ;;  %s1233_s29 = smov 127   ;;  %v807_v24 = vld [vmem:[%s1662_s6 + $0x8] sm:$0xff] }
  0x13   : > { %418 = vmatprep.subr.bf16.mxu1 %v1199_v6  ;;  %vm530_vm2 = vcmp.lt.s32.totalorder %v500_v13, 15  ;;  %vm514_vm3 = vcmp.gt.s32.totalorder %v500_v13, 0  ;;  %v454_v26 = vunpack.c.0.s8 %v453_v25 }
  0x14   : > { %vm531_vm4 = vmpackc.low %vm530_vm2, %vm529_vm0 }
  0x15   : > { %v532_v17 = vsel %vm531_vm4, 65537, %v1218_v3  ;;  %vm515_vm5 = vmpackc.low %vm514_vm3, %vm513_vm1  ;;  %v457_v28 = vsub.s32 %v454_v26, %v456_v8  ;;  %vm545_vm1 = vcmask 15360   ;;  %vm569_vm4 = vcmask 146432  }
  0x16   : > { %419 = vmatpush1.bf16.msra.mxu1 %v1201_v9  ;;  %v536_v18 = vrot.slane %v532_v17, %v519_v14  ;;  %v516_v19 = vsel %vm515_vm5, 65537, %v1218_v3  ;;  %v540_v22 = vrot.slane %v532_v17, %v523_v16 }
  0x17   : > { %420 = vmatprep.subr.bf16.mxu1 %v1202_v12  ;;  %v1322_v20 = vrot.slane %v516_v19, %v523_v16  ;;  %v1325_v23 = vrot.slane %v516_v19, %v519_v14  ;;  %v458_v29 = vrot.slane %v1205_v27, %v457_v28  ;;  %v791_v19 = vld [vmem:[%s1661_s5 + $0x8] sm:$0xff] }
  0x18   : > { %589 = vrot.lane.b32.xlu0 %v536_v18, %s1219_s12 }
  0x19   : > { %579 = vrot.lane.b32.xlu1 %v1322_v20, %s1220_s13  ;;  %v459_v35 = vcombine.high %v458_v29, %v458_v29 }
  0x1a   : > { %421 = vmatpush1.bf16.msra.mxu1 %v1204_v15 }
  0x1c   : > { %591 = vrot.lane.b32.xlu0 %v540_v22, %s1219_s12 }
  0x1d   : > { %1155 = vmatmul.mubr.msk.bf16.vlgmr.msra.gmra.mxu1 %vm402_vm6, %v353_v21  ;;  %v790_v21 = vld [vmem:[%s1661_s5] sm:$0xff] }
  0x1e   : > { %779 = vmatprep.mubr.bf16.mxu1 %v1218_v3 }
  0x20   : > { %577 = vrot.lane.b32.xlu0 %v1325_v23, %s1220_s13 }
  0x24   : > { %565 = vrot.lane.b32.xlu0 %v536_v18, %s1221_s14 }
  0x28   : > { %553 = vrot.lane.b32.xlu0 %v1325_v23, %s1222_s15 }
  0x2c   : > { %541 = vrot.lane.b32.xlu0 %v536_v18, %s1223_s20 }
  0x8a   : > { %v1336_v39 = vpop.permute.xlu0 %589 }
  0x8b   : > { %v1344_v43 = vpop.permute.xlu1 %579  ;;  %vm1666_vm9 = vcmp.ne.s16.totalorder %v1336_v39, 0 }
  0x8c   : > { %vm585_vm2 = vcmp.ne.s16.totalorder %v1344_v43, 0 }
  0x8e   : > { %v1338_v40 = vpop.permute.xlu0 %591 }
  0x8f   : > { %v1385_v56 = vsel %vm593_vm12, %v1336_v39, %v1338_v40  ;;  %vm1667_vm13 = vcmp.ne.s16.totalorder %v1338_v40, 0  ;;  %vm1669_vm12 = vcmask 130048  }
  0x90   : > { %vm1668_vm0 = vcmp.ne.s16.totalorder %v1385_v56, 0 }
  0x92   : > { %v1340_v41 = vpop.permute.xlu0 %577 }
  0x93   : > { %vm583_vm10 = vcmp.ne.s16.totalorder %v1340_v41, 0  ;;  %v1403_v60 = vsel %vm581_vm14, %v1340_v41, %v1344_v43 }
  0x94   : > { %vm584_vm3 = vcmp.ne.s16.totalorder %v1403_v60, 0 }
  0x96   : > { %v1342_v42 = vpop.permute.xlu0 %565 }
  0x97   : > { %vm571_vm15 = vcmp.ne.s16.totalorder %v1342_v42, 0 }
  0x9a   : > { %v1346_v44 = vpop.permute.xlu0 %553 }
  0x9b   : > { %vm559_vm6 = vcmp.ne.s16.totalorder %v1346_v44, 0 }
  0x9e   : > { %v1357_v48 = vpop.permute.xlu0 %541 }
  0x9f   : > { %vm547_vm11 = vcmp.ne.s16.totalorder %v1357_v48, 0 }
  0xdd   : > { %v440_v30 = vpop.f32.mrf.mxu1 }
  0xde   : > { %v447_v31 = vpack.c.bf16 %v440_v30, %v440_v30 }
  0xdf   : > { %v442_v32 = vpop.f32.mrf.mxu1 }
  0xe0   : > { %v448_v33 = vpack.c.bf16 %v442_v32, %v442_v32  ;;  %v463_v34 = vsel %vm460_vm7, %v447_v31, %v458_v29 }
  0xe1   : > { %471 = vrot.lane.b32.xlu1 %v463_v34, %s1225_s21  ;;  %v444_v36 = vpop.f32.mrf.mxu1 }
  0xe2   : > { %v466_v38 = vsel %vm460_vm7, %v448_v33, %v459_v35 }
  0xe3   : > { %v445_v37 = vpop.f32.mrf.mxu1 }
  0xe5   : > { %473 = vrot.lane.b32.xlu1 %v466_v38, %s1225_s21 }
  0xe9   : > { %567 = vrot.lane.b32.xlu1 %v540_v22, %s1221_s14  ;;  %s1166_s14 = sshll.u32 %s1703_s10, 5 }
  0xea   : > { %s349_s17 = scalar_lea.vmem %s1665_s9, %s1166_s14 }
  0xed   : > { %555 = vrot.lane.b32.xlu1 %v1322_v20, %s1222_s15 }
  0xf1   : > { %543 = vrot.lane.b32.xlu1 %v540_v22, %s1223_s20  ;;  %v806_v22 = vld [vmem:[%s1662_s6] sm:$0xff] }
 0x153   : > { %v472_v45 = vpop.permute.xlu1 %471 }
 0x154   : > { %v1350_v46 = vsel %vm475_vm8, 0, %v472_v45 }
 0x155   : > { %642 = vrot.lane.b32.xlu1 %v1350_v46, %s1226_s22  ;;  %v598_v47 = vsel %vm1666_vm9, %v1350_v46, 0  ;;  %v586_v50 = vsel %vm583_vm10, %v1350_v46, 0  ;;  %v603_v51 = vrot.slane %v1350_v46, 4  ;;  %v550_v53 = vsel %vm547_vm11, %v1350_v46, 0 }
 0x156   : > { %690 = vrot.lane.b32.xlu0 %v598_v47, %s1227_s23  ;;  %v574_v63 = vsel %vm571_vm15, %v1350_v46, 0  ;;  %v562_v6 = vsel %vm559_vm6, %v1350_v46, 0 }
 0x157   : > { %v474_v49 = vpop.permute.xlu1 %473  ;;  %v654_v2 = vrot.slane %v574_v63, 4  ;;  %v630_v10 = vrot.slane %v562_v6, 4 }
 0x158   : > { %v1376_v54 = vsel %vm475_vm8, %v474_v49, 0  ;;  %v1389_v57 = vsel %vm475_vm8, %v472_v45, %v474_v49 }
 0x159   : > { %669 = vrot.lane.b32.xlu1 %v586_v50, %s1228_s24  ;;  %v600_v58 = vsel %vm1667_vm13, %v1376_v54, 0  ;;  %v599_v61 = vsel %vm1668_vm0, %v1389_v57, 0  ;;  %v588_v62 = vsel %vm585_vm2, %v1376_v54, 0  ;;  %v587_v1 = vsel %vm584_vm3, %v1389_v57, 0 }
 0x15a   : > { %678 = vrot.lane.b32.xlu0 %v603_v51, %s1229_s25  ;;  %v604_v8 = vrot.slane %v1389_v57, 4  ;;  %v605_v13 = vrot.slane %v1376_v54, 4  ;;  %vm1671_vm13 = vcmask 769024   ;;  %vm699_vm0 = vcmask 1043456  }
 0x15b   : > { %v1370_v52 = vpop.permute.xlu1 %567 }
 0x15c   : > { %v1430_v3 = vsel %vm569_vm4, %v1342_v42, %v1370_v52  ;;  %vm573_vm4 = vcmp.ne.s16.totalorder %v1370_v52, 0 }
 0x15d   : > { %618 = vrot.lane.b32.xlu1 %v550_v53, %s1230_s26  ;;  %vm572_vm14 = vcmp.ne.s16.totalorder %v1430_v3, 0  ;;  %v576_v14 = vsel %vm573_vm4, %v1376_v54, 0 }
 0x15e   : > { %646 = vrot.lane.b32.xlu0 %v1376_v54, %s1226_s22  ;;  %v575_v9 = vsel %vm572_vm14, %v1389_v57, 0  ;;  %v656_v16 = vrot.slane %v576_v14, 4 }
 0x15f   : > { %v1381_v55 = vpop.permute.xlu1 %555  ;;  %v655_v11 = vrot.slane %v575_v9, 4 }
 0x160   : > { %v1448_v7 = vsel %vm1669_vm12, %v1346_v44, %v1381_v55  ;;  %vm561_vm9 = vcmp.ne.s16.totalorder %v1381_v55, 0  ;;  %vm1674_vm12 = vcmask 777216   ;;  %v1209_v55 = vld [vmem:[%s1660_s4 + $0x4] ss:$8 sps:$4 sm:$0xff]  }
 0x161   : > { %644 = vrot.lane.b32.xlu1 %v1389_v57, %s1226_s22  ;;  %v564_v17 = vsel %vm561_vm9, %v1376_v54, 0 }
 0x162   : > { %694 = vrot.lane.b32.xlu0 %v600_v58, %s1227_s23  ;;  %v632_v18 = vrot.slane %v564_v17, 4 }
 0x163   : > { %v1399_v59 = vpop.permute.xlu1 %543 }
 0x164   : > { %v1418_v0 = vsel %vm545_vm1, %v1357_v48, %v1399_v59  ;;  %vm1672_vm7 = vcmp.ne.s16.totalorder %v1399_v59, 0  ;;  %vm1673_vm1 = vcmp.ne.s16.totalorder %v1448_v7, 0 }
 0x165   : > { %692 = vrot.lane.b32.xlu1 %v599_v61, %s1227_s23  ;;  %vm1670_vm5 = vcmp.ne.s16.totalorder %v1418_v0, 0  ;;  %v552_v5 = vsel %vm1672_vm7, %v1376_v54, 0  ;;  %v563_v12 = vsel %vm1673_vm1, %v1389_v57, 0  ;;  %vm1676_vm7 = vcmask 908288  }
 0x166   : > { %673 = vrot.lane.b32.xlu0 %v588_v62, %s1228_s24  ;;  %v551_v4 = vsel %vm1670_vm5, %v1389_v57, 0  ;;  %v631_v15 = vrot.slane %v563_v12, 4  ;;  %vm1675_vm5 = vcmask 785408   ;;  %vm639_vm1 = vcmask 916480  }
 0x169   : > { %671 = vrot.lane.b32.xlu1 %v587_v1, %s1228_s24 }
 0x16a   : > { %657 = vrot.lane.b32.xlu0 %v654_v2, %s1231_s27 }
 0x16d   : > { %620 = vrot.lane.b32.xlu1 %v551_v4, %s1230_s26 }
 0x16e   : > { %622 = vrot.lane.b32.xlu0 %v552_v5, %s1230_s26 }
 0x171   : > { %680 = vrot.lane.b32.xlu1 %v604_v8, %s1229_s25 }
 0x172   : > { %633 = vrot.lane.b32.xlu0 %v630_v10, %s1232_s28 }
 0x175   : > { %659 = vrot.lane.b32.xlu1 %v655_v11, %s1231_s27 }
 0x176   : > { %682 = vrot.lane.b32.xlu0 %v605_v13, %s1229_s25 }
 0x179   : > { %635 = vrot.lane.b32.xlu1 %v631_v15, %s1232_s28 }
 0x17a   : > { %661 = vrot.lane.b32.xlu0 %v656_v16, %s1231_s27 }
 0x17d   : > { %608 = vrot.lane.b32.xlu1 %v604_v8, %s1233_s29 }
 0x17e   : > { %637 = vrot.lane.b32.xlu0 %v632_v18, %s1232_s28 }
 0x181   : > { %606 = vrot.lane.b32.xlu1 %v603_v51, %s1233_s29 }
 0x182   : > { %610 = vrot.lane.b32.xlu0 %v605_v13, %s1233_s29 }
 0x185   : > { %799 = vperm.xlu1 %1192, %v791_v19  }
 0x186   : > { %794 = vperm.xlu0 %1191, %v790_v21  }
 0x189   : > { %810 = vperm.xlu1 %1192, %v806_v22  }
 0x18a   : > { %815 = vperm.xlu0 %1191, %v807_v24  }
 0x1c7   : > { %v643_v25 = vpop.permute.xlu1 %642 }
 0x1c8   : > { %v691_v26 = vpop.permute.xlu0 %690 }
 0x1cb   : > { %v670_v27 = vpop.permute.xlu1 %669 }
 0x1cc   : > { %v679_v28 = vpop.permute.xlu0 %678 }
 0x1cf   : > { %v619_v29 = vpop.permute.xlu1 %618 }
 0x1d0   : > { %v647_v30 = vpop.permute.xlu0 %646 }
 0x1d3   : > { %v645_v31 = vpop.permute.xlu1 %644 }
 0x1d4   : > { %v695_v32 = vpop.permute.xlu0 %694  ;;  %v650_v8 = vsel %vm1676_vm7, %v645_v31, %v647_v30  ;;  %v649_v10 = vsel %vm1676_vm7, %v643_v25, %v645_v31  ;;  %vm1680_vm7 = vcmp.ne.s16.totalorder %v1322_v20, 0  ;;  %v1206_v31 = vld [vmem:[%s1659_s3] sm:$0xff]  }
 0x1d7   : > { %v693_v33 = vpop.permute.xlu1 %692 }
 0x1d8   : > { %v697_v34 = vsel %vm1671_vm13, %v691_v26, %v693_v33  ;;  %v698_v35 = vsel %vm1671_vm13, %v693_v33, %v695_v32  ;;  %v674_v36 = vpop.permute.xlu0 %673  ;;  %vm1677_vm13 = vcmask 900096  }
 0x1d9   : > { %v742_v37 = vsel %vm699_vm0, %v697_v34, 0  ;;  %1157 = vmatprep.subr.msk.bf16.mxu1 %vm699_vm0, %v698_v35 }
 0x1da   : > { %754 = vmatpush1.bf16.msra.mxu1 %v742_v37 }
 0x1db   : > { %v672_v38 = vpop.permute.xlu1 %671 }
 0x1dc   : > { %v658_v45 = vpop.permute.xlu0 %657  ;;  %v677_v61 = vsel %vm1675_vm5, %v672_v38, %v674_v36  ;;  %v676_v63 = vsel %vm1675_vm5, %v670_v27, %v672_v38  ;;  %vm612_vm5 = vcmask 1039360   ;;  %v528_v27 = vsel %vm1680_vm7, %v1389_v57, 0 }
 0x1df   : > { %v621_v47 = vpop.permute.xlu1 %620 }
 0x1e0   : > { %v623_v49 = vpop.permute.xlu0 %622 }
 0x1e3   : > { %v681_v50 = vpop.permute.xlu1 %680 }
 0x1e4   : > { %v634_v51 = vpop.permute.xlu0 %633  ;;  %v685_v54 = vsel %vm1674_vm12, %v679_v28, %v681_v50 }
 0x1e5   : > { %v726_v4 = vsel %vm699_vm0, %v676_v63, %v685_v54 }
 0x1e7   : > { %v660_v53 = vpop.permute.xlu1 %659 }
 0x1e8   : > { %v683_v58 = vpop.permute.xlu0 %682  ;;  %v664_v5 = vsel %vm1677_vm13, %v658_v45, %v660_v53 }
 0x1e9   : > { %v686_v62 = vsel %vm1674_vm12, %v681_v50, %v683_v58  ;;  %vm1678_vm12 = vcmask 1031168   ;;  %v718_v13 = vsel %vm699_vm0, %v649_v10, %v664_v5 }
 0x1ea   : > { %v730_v1 = vsel %vm699_vm0, %v677_v61, %v686_v62  ;;  %v626_v16 = vsel %vm1678_vm12, %v621_v47, %v623_v49  ;;  %v625_v18 = vsel %vm1678_vm12, %v619_v29, %v621_v47  ;;  %vm737_vm12 = vcmask 588800  }
 0x1eb   : > { %755 = vmatprep.subr.bf16.mxu1 %v730_v1  ;;  %v636_v2 = vpop.permute.xlu1 %635 }
 0x1ec   : > { %v662_v6 = vpop.permute.xlu0 %661  ;;  %756 = vmatpush1.bf16.msra.mxu1 %v726_v4  ;;  %v640_v14 = vsel %vm639_vm1, %v634_v51, %v636_v2 }
 0x1ed   : > { %v665_v9 = vsel %vm1677_vm13, %v660_v53, %v662_v6  ;;  %v710_v22 = vsel %vm699_vm0, %v625_v18, %v640_v14  ;;  %vm1679_vm13 = vcmp.ne.s16.totalorder %v1325_v23, 0  ;;  %v1023_v18 = vld [vmem:[%s1663_s7 + $0x8] sm:$0xff] }
 0x1ee   : > { %v722_v11 = vsel %vm699_vm0, %v650_v8, %v665_v9  ;;  %v527_v29 = vsel %vm1679_vm13, %v1350_v46, 0 }
 0x1ef   : > { %757 = vmatprep.subr.bf16.mxu1 %v722_v11  ;;  %v609_v12 = vpop.permute.xlu1 %608 }
 0x1f0   : > { %v638_v15 = vpop.permute.xlu0 %637  ;;  %758 = vmatpush1.bf16.msra.mxu1 %v718_v13 }
 0x1f1   : > { %v641_v17 = vsel %vm639_vm1, %v636_v2, %v638_v15 }
 0x1f2   : > { %v714_v19 = vsel %vm699_vm0, %v626_v16, %v641_v17 }
 0x1f3   : > { %759 = vmatprep.subr.bf16.mxu1 %v714_v19  ;;  %v607_v21 = vpop.permute.xlu1 %606 }
 0x1f4   : > { %v613_v24 = vsel %vm612_vm5, %v607_v21, %v609_v12  ;;  %v611_v25 = vpop.permute.xlu0 %610  ;;  %760 = vmatpush1.bf16.msra.mxu1 %v710_v22 }
 0x1f5   : > { %v614_v26 = vsel %vm612_vm5, %v609_v12, %v611_v25  ;;  %v702_v30 = vsel %vm699_vm0, %v527_v29, %v613_v24 }
 0x1f6   : > { %v706_v28 = vsel %vm699_vm0, %v528_v27, %v614_v26 }
 0x1f7   : > { %761 = vmatprep.subr.bf16.mxu1 %v706_v28 }
 0x1f8   : > { %762 = vmatpush1.bf16.msra.mxu1 %v702_v30 }
 0x1fb   : > { %1158 = vmatmul.mubr.msk.bf16.vlgmr.msra.gmra.mxu1 %vm737_vm12, %v1206_v31 }
 0x200   : > { %v800_v32 = vpop.permute.xlu1 %799 }
 0x201   : > { %v795_v33 = vpop.permute.xlu0 %794 }
 0x204   : > { %v811_v57 = vpop.permute.xlu1 %810 }
 0x205   : > { %v816_v49 = vpop.permute.xlu0 %815 }
 0x2bb   : > { %v781_v34 = vpop.f32.mrf.mxu1 }
 0x2bc   : > { %v802_v35 = vmul.f32 %v795_v33, %v781_v34 }
 0x2bd   : > { %v783_v36 = vpop.f32.mrf.mxu1 }
 0x2be   : > { %v818_v37 = vadd.f32 %v811_v57, %v802_v35  ;;  %v803_v38 = vmul.f32 %v795_v33, %v783_v36 }
 0x2bf   : > { %v785_v45 = vpop.f32.mrf.mxu1 }
 0x2c0   : > { %v819_v46 = vadd.f32 %v811_v57, %v803_v38  ;;  %v804_v47 = vmul.f32 %v800_v32, %v785_v45  ;;  %v826_v51 = vmul.f32 0.01, %v818_v37  ;;  %vm822_vm0 = vcmp.gt.f32.partialorder %v818_v37, 0.0 }
 0x2c1   : > { %v787_v50 = vpop.f32.mrf.mxu1 }
 0x2c2   : > { %v820_v53 = vadd.f32 %v816_v49, %v804_v47  ;;  %v805_v54 = vmul.f32 %v800_v32, %v787_v50  ;;  %v827_v58 = vmul.f32 0.01, %v819_v46  ;;  %vm823_vm12 = vcmp.gt.f32.partialorder %v819_v46, 0.0 }
 0x2c3   : > { %v830_v1 = vsel %vm822_vm0, %v818_v37, %v826_v51 }
 0x2c4   : > { %vm824_vm13 = vcmp.gt.f32.partialorder %v820_v53, 0.0  ;;  %v828_v61 = vmul.f32 0.01, %v820_v53  ;;  %v821_v62 = vadd.f32 %v816_v49, %v805_v54  ;;  %v831_v5 = vsel %vm823_vm12, %v819_v46, %v827_v58 }
 0x2c5   : > { %vm1694_vm12 = vcmask 908288  }
 0x2c6   : > { %vm825_vm7 = vcmp.gt.f32.partialorder %v821_v62, 0.0  ;;  %v829_v63 = vmul.f32 0.01, %v821_v62  ;;  %v832_v2 = vsel %vm824_vm13, %v820_v53, %v828_v61  ;;  %vm1685_vm13 = vcmp.ne.s16.totalorder %v1385_v56, 0  ;;  %v1022_v56 = vld [vmem:[%s1663_s7] sm:$0xff] }
 0x2c7   : > { %v836_v4 = vpack.c.bf16 %v832_v2, %v830_v1 }
 0x2c8   : > { %v833_v6 = vsel %vm825_vm7, %v821_v62, %v829_v63  ;;  %vm1690_vm7 = vcmask 785408  }
 0x2c9   : > { %840 = vrot.lane.b32.xlu1 %v836_v4, %s1225_s21  ;;  %v837_v8 = vpack.c.bf16 %v833_v6, %v831_v5 }
 0x2cb   : > { %842 = vrot.lane.b32.xlu0 %v837_v8, %s1225_s21 }
 0x33b   : > { %v841_v9 = vpop.permute.xlu1 %840 }
 0x33c   : > { %v1532_v10 = vsel %vm475_vm8, 0, %v841_v9 }
 0x33d   : > { %943 = vrot.lane.b32.xlu1 %v1532_v10, %s1229_s25  ;;  %907 = vrot.lane.b32.xlu0 %v1532_v10, %s1226_s22  ;;  %v860_v11 = vsel %vm571_vm15, %v1532_v10, 0  ;;  %v863_v12 = vsel %vm583_vm10, %v1532_v10, 0  ;;  %v843_v13 = vpop.permute.xlu0 %842  ;;  %v854_v43 = vsel %vm547_vm11, %v1532_v10, 0  ;;  %v857_v60 = vsel %vm559_vm6, %v1532_v10, 0 }
 0x33e   : > { %v1547_v14 = vsel %vm475_vm8, %v841_v9, %v843_v13  ;;  %v850_v15 = vsel %vm475_vm8, %v843_v13, 0  ;;  %vm1681_vm8 = vcmp.ne.s16.totalorder %v1448_v7, 0  ;;  %vm1682_vm10 = vcmp.ne.s16.totalorder %v1399_v59, 0 }
 0x33f   : > { %v865_v41 = vsel %vm585_vm2, %v850_v15, 0  ;;  %v864_v42 = vsel %vm584_vm3, %v1547_v14, 0  ;;  %v862_v16 = vsel %vm573_vm4, %v850_v15, 0  ;;  %v861_v17 = vsel %vm572_vm14, %v1547_v14, 0  ;;  %vm1691_vm14 = vmmov %vm1690_vm7 }
 0x340   : > { %v859_v52 = vsel %vm561_vm9, %v850_v15, 0  ;;  %v858_v3 = vsel %vm1681_vm8, %v1547_v14, 0  ;;  %v856_v48 = vsel %vm1682_vm10, %v850_v15, 0  ;;  %vm1683_vm11 = vcmp.ne.s16.totalorder %v1418_v0, 0  ;;  %vm1695_vm8 = vmmov %vm1694_vm12 }
 0x341   : > { %920 = vrot.lane.b32.xlu1 %v860_v11, %s1231_s27  ;;  %933 = vrot.lane.b32.xlu0 %v863_v12, %s1228_s24  ;;  %v855_v44 = vsel %vm1683_vm11, %v1547_v14, 0  ;;  %vm1684_vm9 = vcmask 130048   ;;  %v867_v59 = vsel %vm1685_vm13, %v1547_v14, 0  ;;  %vm1686_vm15 = vcmp.ne.s16.totalorder %v1338_v40, 0  ;;  %v1038_v40 = vld [vmem:[%s1664_s8] sm:$0xff] }
 0x342   : > { %1162 = vmatprep.mubr.msk.bf16.mxu0 %vm1684_vm9, %v1209_v55  ;;  %v868_v0 = vsel %vm1686_vm15, %v850_v15, 0  ;;  %vm1687_vm2 = vcmp.ne.s16.totalorder %v1336_v39, 0  ;;  %v1039_v39 = vld [vmem:[%s1664_s8 + $0x8] sm:$0xff]  ;;  %vm1688_vm3 = vcmask 777216   ;;  %vm1692_vm4 = vcmask 900096  }
 0x343   : > { %v866_v7 = vsel %vm1687_vm2, %v1532_v10, 0  ;;  %vm1689_vm6 = vmmov %vm1688_vm3  ;;  %vm1696_vm10 = vcmask 1031168   ;;  %vm1699_vm9 = vcmp.ne.s16.totalorder %v1325_v23, 0  ;;  %vm1700_vm13 = vcmask 769024  }
 0x344   : > { %vm1693_vm0 = vmmov %vm1692_vm4  ;;  %v852_v9 = vsel %vm1699_vm9, %v1532_v10, 0 }
 0x345   : > { %947 = vrot.lane.b32.xlu0 %v850_v15, %s1229_s25  ;;  %945 = vrot.lane.b32.xlu1 %v1547_v14, %s1229_s25  ;;  %vm1697_vm11 = vmmov %vm1696_vm10 }
 0x346   : > { %vm1701_vm15 = vmmov %vm1700_vm13 }
 0x349   : > { %909 = vrot.lane.b32.xlu0 %v1547_v14, %s1226_s22  ;;  %911 = vrot.lane.b32.xlu1 %v850_v15, %s1226_s22 }
 0x34d   : > { %937 = vrot.lane.b32.xlu1 %v865_v41, %s1228_s24  ;;  %935 = vrot.lane.b32.xlu0 %v864_v42, %s1228_s24 }
 0x351   : > { %924 = vrot.lane.b32.xlu0 %v862_v16, %s1231_s27  ;;  %922 = vrot.lane.b32.xlu1 %v861_v17, %s1231_s27 }
 0x355   : > { %884 = vrot.lane.b32.xlu0 %v854_v43, %s1230_s26  ;;  %897 = vrot.lane.b32.xlu1 %v857_v60, %s1232_s28 }
 0x359   : > { %901 = vrot.lane.b32.xlu0 %v859_v52, %s1232_s28  ;;  %899 = vrot.lane.b32.xlu1 %v858_v3, %s1232_s28 }
 0x35d   : > { %888 = vrot.lane.b32.xlu1 %v856_v48, %s1230_s26  ;;  %886 = vrot.lane.b32.xlu0 %v855_v44, %s1230_s26 }
 0x361   : > { %873 = vrot.lane.b32.xlu1 %v1547_v14, %s1233_s29  ;;  %875 = vrot.lane.b32.xlu0 %v850_v15, %s1233_s29  ;;  %v1207_v15 = vld [vmem:[%s1660_s4] ss:$8 sps:$4 sm:$0xff]  }
 0x365   : > { %871 = vrot.lane.b32.xlu1 %v1532_v10, %s1233_s29  ;;  %958 = vrot.lane.b32.xlu0 %v867_v59, %s1227_s23 }
 0x369   : > { %960 = vrot.lane.b32.xlu1 %v868_v0, %s1227_s23  ;;  %956 = vrot.lane.b32.xlu0 %v866_v7, %s1227_s23 }
 0x36d   : > { %1026 = vperm.xlu1 %1192, %v1022_v56   ;;  %1031 = vperm.xlu0 %1191, %v1023_v18  }
 0x371   : > { %1042 = vperm.xlu1 %1192, %v1038_v40   ;;  %1047 = vperm.xlu0 %1191, %v1039_v39  }
 0x3af   : > { %v944_v19 = vpop.permute.xlu1 %943  ;;  %v908_v21 = vpop.permute.xlu0 %907 }
 0x3b3   : > { %v921_v22 = vpop.permute.xlu1 %920  ;;  %v934_v24 = vpop.permute.xlu0 %933 }
 0x3b7   : > { %v946_v25 = vpop.permute.xlu1 %945  ;;  %v948_v26 = vpop.permute.xlu0 %947 }
 0x3b8   : > { %v950_v27 = vsel %vm1688_vm3, %v946_v25, %v948_v26  ;;  %v949_v28 = vsel %vm1689_vm6, %v944_v19, %v946_v25 }
 0x3b9   : > { %979 = vmatprep.subr.bf16.mxu0 %v950_v27 }
 0x3ba   : > { %980 = vmatpush1.bf16.msra.mxu0 %v949_v28 }
 0x3bb   : > { %v912_v29 = vpop.permute.xlu1 %911  ;;  %v910_v30 = vpop.permute.xlu0 %909 }
 0x3bc   : > { %v914_v38 = vsel %vm1694_vm12, %v910_v30, %v912_v29  ;;  %v913_v47 = vsel %vm1695_vm8, %v908_v21, %v910_v30 }
 0x3bf   : > { %v938_v31 = vpop.permute.xlu1 %937  ;;  %v936_v32 = vpop.permute.xlu0 %935 }
 0x3c0   : > { %v940_v33 = vsel %vm1690_vm7, %v936_v32, %v938_v31  ;;  %v939_v34 = vsel %vm1691_vm14, %v934_v24, %v936_v32 }
 0x3c1   : > { %981 = vmatprep.subr.bf16.mxu0 %v940_v33 }
 0x3c2   : > { %982 = vmatpush1.bf16.msra.mxu0 %v939_v34 }
 0x3c3   : > { %v923_v57 = vpop.permute.xlu1 %922  ;;  %v925_v35 = vpop.permute.xlu0 %924 }
 0x3c4   : > { %v927_v36 = vsel %vm1692_vm4, %v923_v57, %v925_v35  ;;  %v926_v37 = vsel %vm1693_vm0, %v921_v22, %v923_v57 }
 0x3c5   : > { %983 = vmatprep.subr.bf16.mxu0 %v927_v36 }
 0x3c6   : > { %984 = vmatpush1.bf16.msra.mxu0 %v926_v37 }
 0x3c7   : > { %v898_v45 = vpop.permute.xlu1 %897  ;;  %985 = vmatprep.subr.bf16.mxu0 %v914_v38  ;;  %v885_v46 = vpop.permute.xlu0 %884 }
 0x3ca   : > { %986 = vmatpush1.bf16.msra.mxu0 %v913_v47 }
 0x3cb   : > { %v900_v49 = vpop.permute.xlu1 %899  ;;  %v902_v50 = vpop.permute.xlu0 %901 }
 0x3cc   : > { %v904_v51 = vsel %vm639_vm1, %v900_v49, %v902_v50  ;;  %v903_v53 = vsel %vm639_vm1, %v898_v45, %v900_v49  ;;  %vm1698_vm1 = vcmp.ne.s16.totalorder %v1322_v20, 0 }
 0x3cd   : > { %987 = vmatprep.subr.bf16.mxu0 %v904_v51 }
 0x3ce   : > { %988 = vmatpush1.bf16.msra.mxu0 %v903_v53 }
 0x3cf   : > { %v889_v54 = vpop.permute.xlu1 %888  ;;  %v887_v58 = vpop.permute.xlu0 %886 }
 0x3d0   : > { %v891_v61 = vsel %vm1696_vm10, %v887_v58, %v889_v54  ;;  %v890_v62 = vsel %vm1697_vm11, %v885_v46, %v887_v58 }
 0x3d1   : > { %989 = vmatprep.subr.bf16.mxu0 %v891_v61 }
 0x3d2   : > { %990 = vmatpush1.bf16.msra.mxu0 %v890_v62 }
 0x3d3   : > { %v874_v63 = vpop.permute.xlu1 %873  ;;  %v876_v1 = vpop.permute.xlu0 %875 }
 0x3d4   : > { %v878_v2 = vsel %vm612_vm5, %v874_v63, %v876_v1 }
 0x3d5   : > { %991 = vmatprep.subr.bf16.mxu0 %v878_v2 }
 0x3d7   : > { %v872_v4 = vpop.permute.xlu1 %871  ;;  %v959_v5 = vpop.permute.xlu0 %958 }
 0x3d8   : > { %v877_v6 = vsel %vm612_vm5, %v872_v4, %v874_v63 }
 0x3d9   : > { %992 = vmatpush1.bf16.msra.mxu0 %v877_v6 }
 0x3da   : > { %1161 = vmatprep.subr.msk.bf16.mxu0 %vm1698_vm1, %v1547_v14 }
 0x3db   : > { %v961_v8 = vpop.permute.xlu1 %960  ;;  %v957_v12 = vpop.permute.xlu0 %956 }
 0x3dc   : > { %v963_v11 = vsel %vm1700_vm13, %v959_v5, %v961_v8  ;;  %v962_v13 = vsel %vm1701_vm15, %v957_v12, %v959_v5 }
 0x3dd   : > { %994 = vmatpush1.bf16.msra.mxu0 %v852_v9 }
 0x3de   : > { %1009 = vmatprep.subr.bf16.mxu0 %v963_v11 }
 0x3e1   : > { %1010 = vmatpush2.bf16.msra.mxu0 %v962_v13 }
 0x3e4   : > { %1012 = vmatmul.mubr.bf16.vlgmr.msra.gmra.mxu0 %v1207_v15 }
 0x3e8   : > { %v1027_v20 = vpop.permute.xlu1 %1026  ;;  %v1032_v14 = vpop.permute.xlu0 %1031 }
 0x3ec   : > { %v1043_v16 = vpop.permute.xlu1 %1042  ;;  %v1048_v48 = vpop.permute.xlu0 %1047 }
 0x4a4   : > { %v1013_v41 = vpop.f32.mrf.mxu0 }
 0x4a5   : > { %v1034_v42 = vmul.f32 %v1027_v20, %v1013_v41 }
 0x4a6   : > { %v1015_v23 = vpop.f32.mrf.mxu0 }
 0x4a7   : > { %v1050_v10 = vadd.f32 %v1043_v16, %v1034_v42  ;;  %v1035_v17 = vmul.f32 %v1027_v20, %v1015_v23 }
 0x4a8   : > { %v1017_v43 = vpop.f32.mrf.mxu0 }
 0x4a9   : > { %vm1054_vm5 = vcmp.gt.f32.partialorder %v1050_v10, 0.0  ;;  %v1058_v60 = vmul.f32 0.01, %v1050_v10  ;;  %v1051_v52 = vadd.f32 %v1043_v16, %v1035_v17  ;;  %v1036_v3 = vmul.f32 %v1032_v14, %v1017_v43 }
 0x4aa   : > { %v1019_v44 = vpop.f32.mrf.mxu0 }
 0x4ab   : > { %v1062_v55 = vsel %vm1054_vm5, %v1050_v10, %v1058_v60  ;;  %vm1055_vm2 = vcmp.gt.f32.partialorder %v1051_v52, 0.0  ;;  %v1059_v59 = vmul.f32 0.01, %v1051_v52  ;;  %v1052_v0 = vadd.f32 %v1048_v48, %v1036_v3 }
 0x4ac   : > { %1066 = vst [vmem:[%s349_s17] sm:$0xff] %v1062_v55  ;;  %v1037_v7 = vmul.f32 %v1032_v14, %v1019_v44 }
 0x4ad   : > { %v1063_v56 = vsel %vm1055_vm2, %v1051_v52, %v1059_v59  ;;  %vm1056_vm3 = vcmp.gt.f32.partialorder %v1052_v0, 0.0  ;;  %v1060_v18 = vmul.f32 0.01, %v1052_v0 }
 0x4ae   : > { %1067 = vst [vmem:[%s349_s17 + $0x8] sm:$0xff] %v1063_v56  ;;  %v1053_v40 = vadd.f32 %v1048_v48, %v1037_v7 }
 0x4af   : > { %v1064_v39 = vsel %vm1056_vm3, %v1052_v0, %v1060_v18 }
 0x4b0   : > { %1068 = vst [vmem:[%s349_s17 + $0x10] sm:$0xff] %v1064_v39  ;;  %vm1057_vm6 = vcmp.gt.f32.partialorder %v1053_v40, 0.0  ;;  %v1061_v19 = vmul.f32 0.01, %v1053_v40 }
 0x4b2   : > { %v1065_v21 = vsel %vm1057_vm6, %v1053_v40, %v1061_v19 }
 0x4b3   : > { %1069 = vst [vmem:[%s349_s17 + $0x18] sm:$0xff] %v1065_v21 }
 0x4b4 PF: > { %s19_s30 = sadd.s32 1, %s1216_s30  }
 0x4b5   : > { %p16_p4 = scmp.ge.s32.totalorder %s19_s30, 4  }
 0x4b7   :  { %18 = sbr.rel (!%p16_p4) target bundleno = 1 (0x1), region = 89 }

</bundles_post_ra>
